<compile_context>
chip_gen: v5e
topology: v5e:2x2
jax: 0.10.0
libtpu: 0.0.40
codegen_flags: <defaults>
</compile_context>

<pallas_src>
import functools

import jax
import jax.numpy as jnp
import numpy as np
from jax import lax
from jax.experimental import pallas as pl
from jax.experimental.pallas import tpu as pltpu


def _round_up(x, m):
    return ((x + m - 1) // m) * m


def _cdiv(a, b):
    return -(-a // b)


def _pick_vmem_limit():
    """~96 MiB scoped limit on v5e/v6e (128 MiB physical), ~48 MiB on v7x."""
    try:
        cap = pltpu.get_tpu_info().vmem_capacity_bytes
    except Exception:
        cap = 64 * 1024 * 1024
    return int(min(cap * 3 // 4, 100 * 1024 * 1024))


def _convt_kernel(x_ref, xh_ref, w_ref, b_ref, o_ref, xcat_ref, *,
                  K, C_in, dilation, T):
    """One (batch, L-tile) grid step.

    x_ref:    (1, C_in, T)        main input window (zero-inserted + padded)
    xh_ref:   (1, 1, C_in, Hmax)  right-halo columns of this tile
    w_ref:    (C_out, K*C_in)     flipped taps stacked on the contraction dim
    b_ref:    (C_out, 1)          f32 bias
    o_ref:    (1, C_out, T)       lane-dense output block
    xcat_ref: (K*C_in, T)         VMEM im2col scratch
    """
    for k in range(K):                         # K is small: fully unrolled
        off = k * dilation                     # static lane offset, off <= halo < T
        rows = slice(k * C_in, (k + 1) * C_in)
        if off == 0:
            xcat_ref[rows, :] = x_ref[0]
        else:
            # Slice the ref directly (no whole-block load + value slicing).
            xcat_ref[rows, :T - off] = x_ref[0, :, off:]
            xcat_ref[rows, T - off:] = xh_ref[0, 0, :, :off]
    acc = jnp.dot(w_ref[...], xcat_ref[...],
                  preferred_element_type=jnp.float32)        # (C_out, T) f32
    o_ref[0] = (acc + b_ref[...]).astype(o_ref.dtype)


def conv_transpose_norm(x, weight, bias=None, *, stride=1, padding=None,
                        output_padding=0, dilation=1, channel_last=False,
                        l_tile=1024, compute_dtype=None):
    """Forward of ConvTransposeNorm (torch.nn.ConvTranspose1d semantics).

    x:      (N, C_in, L)  if channel_last=False   (PyTorch NCL)
            (N, L, C_in)  if channel_last=True
    weight: (C_in, C_out, K)   -- PyTorch ConvTranspose1d weight layout
    bias:   (C_out,) or None
    compute_dtype: optional (e.g. jnp.bfloat16): activations AND weights are
        cast to it for the GEMM (weights lose precision vs. PyTorch f32);
        accumulation is f32 and the output keeps x's dtype.
    """
    C_in_w, C_out, K = weight.shape
    if padding is None:                        # module default "same-ish" padding
        assert K % 2 == 1
        padding = (dilation * (K - 1)) // 2
    if not 0 <= output_padding < max(stride, dilation):
        raise ValueError("output_padding must be smaller than max(stride, dilation)")

    out_dtype = x.dtype
    x_ncl = jnp.transpose(x, (0, 2, 1)) if channel_last else x
    if compute_dtype is not None:
        x_ncl = x_ncl.astype(compute_dtype)
    cdt = x_ncl.dtype
    N, C_in, L = x_ncl.shape
    assert C_in == C_in_w

    halo = dilation * (K - 1)                  # right halo per output tile
    L_out = (L - 1) * stride - 2 * padding + halo + output_padding + 1

    # ---- L_out tiling: T multiple of 128 lanes, shrunk to the VMEM budget. ---
    vmem_limit = _pick_vmem_limit()
    t_min = max(128, _round_up(halo + 1, 128))
    T = max(t_min, min(_round_up(max(l_tile, 128), 128), _round_up(L_out, 128)))
    itm = jnp.dtype(cdt).itemsize
    otm = jnp.dtype(out_dtype).itemsize

    def _footprint(t):
        in_b  = 2 * C_in * (t + max(halo, 1)) * itm       # double-buffered inputs
        out_b = 2 * C_out * t * otm                       # double-buffered output
        xcat  = K * C_in * t * itm                        # im2col scratch
        acc   = C_out * t * 4                             # f32 matmul result
        wgt   = 2 * (C_out * K * C_in * itm + C_out * 4)  # resident weights + bias
        return in_b + out_b + xcat + acc + wgt

    while T > t_min and _footprint(T) > (vmem_limit * 7) // 10:
        T -= 128
    num_tiles = _cdiv(L_out, T)

    # ---- Zero-insertion (interior pad) + edge pad as XLA pads (fusible). -----
    zero = jnp.zeros((), cdt)
    pad_l = halo - padding                     # may be negative (lax.pad crops)
    pad_r = halo - padding + output_padding
    x_zi = lax.pad(x_ncl, zero, [(0, 0, 0), (0, 0, 0), (pad_l, pad_r, stride - 1)])
    assert x_zi.shape[2] == L_out + halo
    L_full = (num_tiles + 1) * T               # one spare tile of zeros for the halo gather
    x_full = lax.pad(x_zi, zero,
                     [(0, 0, 0), (0, 0, 0), (0, L_full - x_zi.shape[2], 0)])

    # Right-halo strips: strip j = x_full[:, :, (j+1)*T : (j+1)*T + halo].
    h_alloc = max(halo, 1)
    x_halo = x_full[:, :, T:].reshape(N, C_in, num_tiles, T)[:, :, :, :h_alloc]
    x_halo = jnp.transpose(x_halo, (0, 2, 1, 3))    # (N, num_tiles, C_in, h_alloc)

    # Flipped taps stacked along the contraction dim (kept in the compute dtype):
    # w_cat[co, k*C_in + ci] == weight[ci, co, K-1-k]
    w_cat = jnp.transpose(weight[:, :, ::-1], (1, 2, 0)).reshape(C_out, K * C_in)
    w_cat = w_cat.astype(cdt)
    if bias is None:
        bias = jnp.zeros((C_out,), jnp.float32)
    b2 = jnp.asarray(bias, jnp.float32).reshape(C_out, 1)

    kernel = functools.partial(_convt_kernel, K=K, C_in=C_in,
                               dilation=dilation, T=T)

    out_pad = pl.pallas_call(
        kernel,
        out_shape=jax.ShapeDtypeStruct((N, C_out, num_tiles * T), out_dtype),
        grid=(N, num_tiles),
        in_specs=[
            pl.BlockSpec((1, C_in, T), lambda n, j: (n, 0, j)),
            pl.BlockSpec((1, 1, C_in, h_alloc), lambda n, j: (n, j, 0, 0)),
            pl.BlockSpec((C_out, K * C_in), lambda n, j: (0, 0)),
            pl.BlockSpec((C_out, 1), lambda n, j: (0, 0)),
        ],
        out_specs=pl.BlockSpec((1, C_out, T), lambda n, j: (n, 0, j)),
        scratch_shapes=[pltpu.VMEM((K * C_in, T), cdt)],
        compiler_params=pltpu.CompilerParams(
            dimension_semantics=("parallel", "parallel"),
            vmem_limit_bytes=vmem_limit,
            allow_input_fusion=[True, True, False, False]),
    )(x_full, x_halo, w_cat, b2)

    out_ncl = out_pad[:, :, :L_out]            # crop the lane-padded tail
    return jnp.transpose(out_ncl, (0, 2, 1)) if channel_last else out_ncl


def _ref_conv_transpose1d(x, w, b, stride, padding, output_padding, dilation):
    """Independent numpy scatter reference (PyTorch ConvTranspose1d semantics)."""
    N, C_in, L = x.shape
    _, C_out, K = w.shape
    L_out = (L - 1) * stride - 2 * padding + dilation * (K - 1) + output_padding + 1
    y = np.zeros((N, C_out, L_out), dtype=np.float64)
    for n in range(N):
        for s in range(L):
            for k in range(K):
                t = s * stride - padding + k * dilation
                if 0 <= t < L_out:
                    y[n, :, t] += w[:, :, k].T @ x[n, :, s]
    return y + b[None, :, None]


if __name__ == "__main__":
    configs = [
        # ConvTransposeNorm(4, 8, kernel_size=3, stride=2, output_padding=1)
        # with the module's default padding = dilation*(k-1)//2 = 1.
        dict(N=2, C_in=4, C_out=8, L=16, K=3, stride=2, padding=1,
             output_padding=1, dilation=1, channel_last=False, l_tile=1024),
        # channel_last path, larger kernel / stride.
        dict(N=2, C_in=8, C_out=4, L=10, K=5, stride=3, padding=2,
             output_padding=2, dilation=1, channel_last=True, l_tile=1024),
        # multi-tile path: L_out = 400, forced T = 128 -> 4 L tiles (halo strips).
        dict(N=2, C_in=6, C_out=10, L=200, K=3, stride=2, padding=1,
             output_padding=1, dilation=1, channel_last=False, l_tile=128),
        # dilation > 1.
        dict(N=1, C_in=4, C_out=6, L=50, K=3, stride=2, padding=2,
             output_padding=1, dilation=2, channel_last=False, l_tile=1024),
        # kernel_size = 1 (module default), no halo.
        dict(N=2, C_in=4, C_out=8, L=32, K=1, stride=1, padding=0,
             output_padding=0, dilation=1, channel_last=False, l_tile=1024),
    ]
    key = jax.random.PRNGKey(0)
    for cfg in configs:
        key, kx, kw, kb = jax.random.split(key, 4)
        x_ncl = jax.random.normal(kx, (cfg["N"], cfg["C_in"], cfg["L"]), jnp.float32)
        weight = 0.1 * jax.random.normal(
            kw, (cfg["C_in"], cfg["C_out"], cfg["K"]), jnp.float32)
        bias = 0.1 * jax.random.normal(kb, (cfg["C_out"],), jnp.float32)

        x_in = jnp.transpose(x_ncl, (0, 2, 1)) if cfg["channel_last"] else x_ncl
        y = conv_transpose_norm(
            x_in, weight, bias,
            stride=cfg["stride"], padding=cfg["padding"],
            output_padding=cfg["output_padding"], dilation=cfg["dilation"],
            channel_last=cfg["channel_last"], l_tile=cfg["l_tile"])
        y = jax.block_until_ready(y)
        y_ncl = jnp.transpose(y, (0, 2, 1)) if cfg["channel_last"] else y

        y_ref = _ref_conv_transpose1d(
            np.asarray(x_ncl), np.asarray(weight), np.asarray(bias),
            cfg["stride"], cfg["padding"], cfg["output_padding"], cfg["dilation"])
        assert y_ncl.shape == y_ref.shape, (y_ncl.shape, y_ref.shape)
        np.testing.assert_allclose(np.asarray(y_ncl), y_ref, rtol=1e-3, atol=1e-3)

    print("KERNEL_OK")
</pallas_src>

<mosaic_0001>
module attributes {stable_mosaic.version = 11 : i64} {
  func.func @_convt_kernel(%arg0: i32, %arg1: i32, %arg2: memref<1x4x128xf32, #tpu.memory_space<vmem>>, %arg3: memref<1x1x4x2xf32, #tpu.memory_space<vmem>>, %arg4: memref<8x12xf32, #tpu.memory_space<vmem>>, %arg5: memref<8x1xf32, #tpu.memory_space<vmem>>, %arg6: memref<1x8x128xf32, #tpu.memory_space<vmem>>, %arg7: memref<12x128xf32, #tpu.memory_space<vmem>>) attributes {dimension_semantics = [#tpu.dimension_semantics<parallel>, #tpu.dimension_semantics<parallel>], iteration_bounds = array<i64: 2, 1>, scalar_prefetch = 0 : i64, scratch_operands = 1 : i64, tpu.core_type = #tpu.core_type<tc>, window_params = [{transform_indices = @transform_0, window_bounds = array<i64: 1, 4, 128>}, {transform_indices = @transform_1, window_bounds = array<i64: 1, 1, 4, 2>}, {pipeline_mode = #tpu.pipeline_mode<synchronous>, transform_indices = @transform_2, window_bounds = array<i64: 8, 12>}, {pipeline_mode = #tpu.pipeline_mode<synchronous>, transform_indices = @transform_3, window_bounds = array<i64: 8, 1>}, {transform_indices = @transform_4, window_bounds = array<i64: 1, 8, 128>}]} {
    %c0 = arith.constant 0 : index
    %c0_0 = arith.constant 0 : index
    %c0_1 = arith.constant 0 : index
    %0 = vector.load %arg2[%c0, %c0_0, %c0_1] : memref<1x4x128xf32, #tpu.memory_space<vmem>>, vector<1x4x128xf32>
    %1 = vector.shape_cast %0 : vector<1x4x128xf32> to vector<4x128xf32>
    %c0_2 = arith.constant 0 : index
    %c0_3 = arith.constant 0 : index
    %2 = vector.load %arg7[%c0_2, %c0_3] : memref<12x128xf32, #tpu.memory_space<vmem>>, vector<4x128xf32>
    tpu.vector_store %arg7[%c0_2, %c0_3], %1 {strides = array<i32>} : memref<12x128xf32, #tpu.memory_space<vmem>>, vector<4x128xf32>,
    %c0_4 = arith.constant 0 : index
    %c0_5 = arith.constant 0 : index
    %c1 = arith.constant 1 : index
    %3 = vector.load %arg2[%c0_4, %c0_5, %c1] : memref<1x4x128xf32, #tpu.memory_space<vmem>>, vector<1x4x127xf32>
    %4 = vector.shape_cast %3 : vector<1x4x127xf32> to vector<4x127xf32>
    %c4 = arith.constant 4 : index
    %c0_6 = arith.constant 0 : index
    %5 = vector.load %arg7[%c4, %c0_6] : memref<12x128xf32, #tpu.memory_space<vmem>>, vector<4x127xf32>
    tpu.vector_store %arg7[%c4, %c0_6], %4 {strides = array<i32>} : memref<12x128xf32, #tpu.memory_space<vmem>>, vector<4x127xf32>,
    %c0_7 = arith.constant 0 : index
    %c0_8 = arith.constant 0 : index
    %c0_9 = arith.constant 0 : index
    %c0_10 = arith.constant 0 : index
    %6 = vector.load %arg3[%c0_7, %c0_8, %c0_9, %c0_10] : memref<1x1x4x2xf32, #tpu.memory_space<vmem>>, vector<1x1x4x1xf32>
    %7 = vector.shape_cast %6 : vector<1x1x4x1xf32> to vector<4x1xf32>
    %c4_11 = arith.constant 4 : index
    %c127 = arith.constant 127 : index
    %8 = vector.load %arg7[%c4_11, %c127] : memref<12x128xf32, #tpu.memory_space<vmem>>, vector<4x1xf32>
    tpu.vector_store %arg7[%c4_11, %c127], %7 {strides = array<i32>} : memref<12x128xf32, #tpu.memory_space<vmem>>, vector<4x1xf32>,
    %c0_12 = arith.constant 0 : index
    %c0_13 = arith.constant 0 : index
    %c2 = arith.constant 2 : index
    %9 = vector.load %arg2[%c0_12, %c0_13, %c2] : memref<1x4x128xf32, #tpu.memory_space<vmem>>, vector<1x4x126xf32>
    %10 = vector.shape_cast %9 : vector<1x4x126xf32> to vector<4x126xf32>
    %c8 = arith.constant 8 : index
    %c0_14 = arith.constant 0 : index
    %11 = vector.load %arg7[%c8, %c0_14] : memref<12x128xf32, #tpu.memory_space<vmem>>, vector<4x126xf32>
    tpu.vector_store %arg7[%c8, %c0_14], %10 {strides = array<i32>} : memref<12x128xf32, #tpu.memory_space<vmem>>, vector<4x126xf32>,
    %c0_15 = arith.constant 0 : index
    %c0_16 = arith.constant 0 : index
    %c0_17 = arith.constant 0 : index
    %c0_18 = arith.constant 0 : index
    %12 = vector.load %arg3[%c0_15, %c0_16, %c0_17, %c0_18] : memref<1x1x4x2xf32, #tpu.memory_space<vmem>>, vector<1x1x4x2xf32>
    %13 = vector.shape_cast %12 : vector<1x1x4x2xf32> to vector<4x2xf32>
    %c8_19 = arith.constant 8 : index
    %c126 = arith.constant 126 : index
    %14 = vector.load %arg7[%c8_19, %c126] : memref<12x128xf32, #tpu.memory_space<vmem>>, vector<4x2xf32>
    tpu.vector_store %arg7[%c8_19, %c126], %13 {strides = array<i32>} : memref<12x128xf32, #tpu.memory_space<vmem>>, vector<4x2xf32>,
    %c0_20 = arith.constant 0 : index
    %c0_21 = arith.constant 0 : index
    %15 = vector.load %arg4[%c0_20, %c0_21] : memref<8x12xf32, #tpu.memory_space<vmem>>, vector<8x12xf32>
    %c0_22 = arith.constant 0 : index
    %c0_23 = arith.constant 0 : index
    %16 = vector.load %arg7[%c0_22, %c0_23] : memref<12x128xf32, #tpu.memory_space<vmem>>, vector<12x128xf32>
    %cst = arith.constant dense<0.000000e+00> : vector<8x128xf32>
    %17 = tpu.matmul %15, %16, %cst {dimension_numbers = #tpu.dot_dimension_numbers<[1], [0], [0], [1], [0, 0, 1, 1], [], []>} : vector<8x12xf32>, vector<12x128xf32>, vector<8x128xf32> -> vector<8x128xf32>
    %c0_24 = arith.constant 0 : index
    %c0_25 = arith.constant 0 : index
    %18 = vector.load %arg5[%c0_24, %c0_25] : memref<8x1xf32, #tpu.memory_space<vmem>>, vector<8x1xf32>
    %19 = vector.broadcast %18 : vector<8x1xf32> to vector<8x128xf32>
    %20 = arith.addf %17, %19 : vector<8x128xf32>
    %c0_26 = arith.constant 0 : index
    %c0_27 = arith.constant 0 : index
    %c0_28 = arith.constant 0 : index
    %21 = vector.load %arg6[%c0_26, %c0_27, %c0_28] : memref<1x8x128xf32, #tpu.memory_space<vmem>>, vector<1x8x128xf32>
    %22 = vector.shape_cast %21 : vector<1x8x128xf32> to vector<8x128xf32>
    %23 = vector.shape_cast %20 : vector<8x128xf32> to vector<1x8x128xf32>
    tpu.vector_store %arg6[%c0_26, %c0_27, %c0_28], %23 {strides = array<i32>} : memref<1x8x128xf32, #tpu.memory_space<vmem>>, vector<1x8x128xf32>,
    return
  }
  func.func @transform_0(%arg0: i32, %arg1: i32) -> (i32, i32, i32) {
    %c0_i32 = arith.constant 0 : i32
    %c0_i32_0 = arith.constant 0 : i32
    return %arg0, %c0_i32, %arg1 : i32, i32, i32
  }
  func.func @transform_1(%arg0: i32, %arg1: i32) -> (i32, i32, i32, i32) {
    %c0_i32 = arith.constant 0 : i32
    %c0_i32_0 = arith.constant 0 : i32
    %c0_i32_1 = arith.constant 0 : i32
    return %arg0, %arg1, %c0_i32, %c0_i32_0 : i32, i32, i32, i32
  }
  func.func @transform_2(%arg0: i32, %arg1: i32) -> (i32, i32) {
    %c0_i32 = arith.constant 0 : i32
    %c0_i32_0 = arith.constant 0 : i32
    %c0_i32_1 = arith.constant 0 : i32
    return %c0_i32, %c0_i32_0 : i32, i32
  }
  func.func @transform_3(%arg0: i32, %arg1: i32) -> (i32, i32) {
    %c0_i32 = arith.constant 0 : i32
    %c0_i32_0 = arith.constant 0 : i32
    %c0_i32_1 = arith.constant 0 : i32
    return %c0_i32, %c0_i32_0 : i32, i32
  }
  func.func @transform_4(%arg0: i32, %arg1: i32) -> (i32, i32, i32) {
    %c0_i32 = arith.constant 0 : i32
    %c0_i32_0 = arith.constant 0 : i32
    return %arg0, %c0_i32, %arg1 : i32, i32, i32
  }
}

</mosaic_0001>

<bundles_post_ra>
// kernel: tpu_custom_call.1
= control target key start
LH: loop header
LB: loop body
LE: loop exit
PB: predicated region body
PF: predicated region fallthrough
CT: control target
= control target key end

     0   :  { %9 = vsyncpa [#allocation4], 0  ;;  %s788_s0 = inlined_call_operand.vmem [shape: f32[2,4,256], index: 0, kind: input, shape index: {}]   ;;  %s789_s1 = inlined_call_operand.vmem [shape: f32[2,1,4,2], index: 1, kind: input, shape index: {}]   ;;  %s790_s2 = inlined_call_operand.hbm [shape: f32[8,12], index: 2, kind: input, shape index: {}]   ;;  %s791_s3 = inlined_call_operand.vmem [shape: f32[8,1], index: 3, kind: input, shape index: {}]   ;;  %s792_s4 = inlined_call_operand.hbm [shape: f32[2,8,128], index: 4, kind: output, shape index: {}]  }
   0x1   :  { %10 = vsyncpa [#allocation5], 0 }
   0x2   :  { %12 = vsyncpa [#allocation5 + $0x1], 0  ;;  %s682_s15 = smov 0   ;;  %s684_s16 = smov 0  }
   0x3   :  { %s686_s17 = smov 0   ;;  %s688_s18 = smov 0  }
   0x4   :  { %s690_s19 = smov 0   ;;  %s692_s20 = smov 0  }
   0x5 LB: > { %s450_s21 = sadd.s32 4294967295, %s651_s20   ;;  %s451_s22 = sadd.s32 4294967294, %s651_s20   ;;  %s651_s20 = sphi %s692_s20, %s18_s20   ;;  %s647_s19 = sphi %s690_s19, %s799_s19   ;;  %s643_s18 = sphi %s688_s18, %s798_s18   ;;  %s639_s17 = sphi %s686_s17, %s797_s17   ;;  %s635_s16 = sphi %s684_s16, %s796_s16   ;;  %s631_s15 = sphi %s682_s15, %s795_s15  }
   0x6   : > { %s30_s23 = sadd.s32 1, %s647_s19  ;;  %s137_s24 = sadd.s32 1, %s639_s17 }
   0x7   : > { %p32_p0 = scmp.ge.s32.totalorder %s30_s23, 2  ;;  %p147_p1 = scmp.ne.s32.totalorder %s639_s17, %s635_s16 }
   0x8   : > { %p148_p2 = scmp.eq.s32.totalorder %s450_s21, 1  ;;  %p153_p3 = scmp.ne.s32.totalorder %s635_s16, %s631_s15 }
   0x9   : > { %s801_s23 = smov (%p32_p0, %s30_s23), 0  ;;  %p154_p5 = scmp.eq.s32.totalorder %s451_s22, 1 }
   0xa   : > { %p722_p4 = por %p148_p2, %p147_p1  ;;  %s132_s26 = ssub.s32 %s647_s19, %s801_s23 }
   0xb   : > { %p452_p6 = scmp.ge.s32.totalorder %s651_s20, 1  ;;  %p135_p7 = scmp.eq.s32.totalorder %s132_s26, 0 }
   0xc   : > { %p729_p8 = por %p154_p5, %p153_p3  ;;  %p161_p9 = scmp.lt.s32.totalorder %s651_s20, 3 }
   0xd   : > { %s735_s28 = scalar_select %p135_p7, %s639_s17, %s137_s24  }
   0xe   : > { %p162_p10 = pnand %p452_p6, %p161_p9  ;;  %p482_p11 = scmp.eq.s32.totalorder %s450_s21, 0 }
   0xf   : > { %s173_s5 = sshll.u32 %s790_s2, 4  ;;  %s653_s6 = smov [#allocation3]   ;;  %s174_s5 = int_to_ptr.hbm [resolvable:$true] %s173_s5 }
  0x10   : > { %p474_p12 = pneg %p162_p10  ;;  %s175_s7 = sshll.u32 %s653_s6, 4  ;;  %s176_s7 = int_to_ptr.vmem [resolvable:$true] %s175_s7 }
  0x11   : > { %212 = sbr.rel (%p162_p10) target bundleno = 295 (0x127), region = 36 }
  0x12   : > { %p475_p13 = pnand %p482_p11, %p474_p12 }
  0x14   : > { %477 = dma.hbm_to_vmem [thread:$0]  (!%p475_p13), %s174_s5, 128, %s176_s7, [#allocation4]  }
  0x16   : > { %622 = dma.done.wait (%p482_p11), [#allocation4], 128  }
  0x17   : > { %624 = vsyncadd (%p482_p11), [#allocation4], 4294967168  ;;  %p249_p0 = scmp.lt.s32.totalorder %s643_s18, 1  ;;  %s654_s14 = smov 126   ;;  %v297_v5 = vld [vmem:[%s791_s3] sm:$0xff]  ;;  %v656_v6 = vmov 0  }
  0x18   : > { %s655_s21 = smov 127   ;;  %537 = vset.pattern.permute.xlu2 %v656_v6  ;;  %538 = vset.pattern.permute.xlu0 %v656_v6  ;;  %vm285_vm0 = vcmask 1027072   ;;  %vm271_vm1 = vcmask 1035264   ;;  %vm292_vm2 = vcmask 1044464   ;;  %vm278_vm3 = vcmask 1044472   ;;  %v294_v13 = vld [vmem:[#allocation3] sm:$0xff] }
  0x19   : > { %s250_s8 = scalar_select %p249_p0, %s643_s18, 1  ;;  %300 = vperm.xlu2 %537, %v297_v5   ;;  %vm307_vm4 = vcmask 1043456   ;;  %vm303_vm5 = vcmask 97280  }
  0x1a   : > { %s246_s5 = sand.u32 1, %s635_s16   ;;  %s464_s7 = sshll.u32 %s643_s18, 3 }
  0x1b   : > { %s467_s9 = sshll.u32 %s250_s8, 3  ;;  %s460_s13 = sshll.u32 %s250_s8, 2 }
  0x1c   : > { %s256_s12 = scalar_lea.vmem %s788_s0, %s467_s9  ;;  %s263_s26 = scalar_lea.vmem %s789_s1, %s460_s13 }
  0x1d   : > { %v280_v0 = vld [vmem:[%s256_s12] sm:$0xf]  ;;  %s457_s6 = sshll.u32 %s246_s5, 3  ;;  %s344_s10 = scalar_lea.hbm %s792_s4, %s464_s7 }
  0x1e   : > { %v264_v1 = vld [vmem:[%s256_s12] sm:$0xf]  ;;  %282 = vrot.lane.b32.xlu0 %v280_v0, %s654_s14  ;;  %s248_s11 = scalar_lea.vmem [#allocation6], %s457_s6  ;;  %s348_s13 = sshll.u32 %s344_s10, 4  ;;  %s349_s13 = int_to_ptr.hbm [resolvable:$true] %s348_s13 }
  0x1f   : > { %v266_v2 = vld [vmem:[%s256_s12] sm:$0xf]  ;;  %265 = vst [vmem:[#allocation2] sm:$0xf] %v264_v1  ;;  %s346_s12 = sshll.u32 %s248_s11, 4  ;;  %s347_s12 = int_to_ptr.vmem [resolvable:$true] %s346_s12 }
  0x20   : > { %268 = vrot.lane.b32.xlu1 %v266_v2, %s655_s21  ;;  %v287_v3 = vld [vmem:[%s263_s26] sm:$0xf] }
  0x21   : > { %v273_v4 = vld [vmem:[%s263_s26] sm:$0xf]  ;;  %s589_s26 = scalar_lea.hbm %s792_s4, 16 }
  0x26   : > { %289 = vrot.lane.b32.xlu0 %v287_v3, %s654_s14  ;;  %s333_s14 = scalar_lea.sflag [#allocation5], %s246_s5 }
  0x28   : > { %275 = vrot.lane.b32.xlu1 %v273_v4, %s655_s21  ;;  %s583_s21 = sshra.s32 %s349_s13, 4  ;;  %s584_s21 = int_to_ptr.hbm [resolvable:$true] %s583_s21 }
  0x29   : > { %s585_s22 = scalar_lea.hbm %s584_s21, 8  ;;  %p590_p5 = scmp.lt.s32.totalorder %s584_s21, %s792_s4 }
  0x2a   : > { %p586_p1 = scmp.ne.s32.totalorder %s584_s21, %s585_s22  ;;  %p591_p6 = scmp.lt.s32.totalorder %s589_s26, %s585_s22 }
  0x2c   : > { %p587_p2 = pnand %p586_p1, %p722_p4  ;;  %p592_p7 = por %p591_p6, %p590_p5 }
  0x2e   : > { %p588_p3 = pneg %p587_p2 }
  0x30   : > { %p593_p9 = pnand %p592_p7, %p588_p3 }
  0x73   : > { %v301_v14 = vpop.permute.xlu2 %300 }
  0x90   : > { %v283_v7 = vpop.permute.xlu0 %282 }
  0x91   : > { %286 = vst.msk [vmem:[#allocation2 + $0x8] sm:$0xf] %vm285_vm0, %v283_v7 }
  0x92   : > { %v269_v8 = vpop.permute.xlu1 %268 }
  0x93   : > { %272 = vst.msk [vmem:[#allocation2 + $0x4] sm:$0xf] %vm271_vm1, %v269_v8 }
  0x98   : > { %v290_v9 = vpop.permute.xlu0 %289 }
  0x99   : > { %293 = vst.msk [vmem:[#allocation2 + $0x8] sm:$0xf] %vm292_vm2, %v290_v9 }
  0x9a   : > { %v276_v10 = vpop.permute.xlu1 %275 }
  0x9b   : > { %279 = vst.msk [vmem:[#allocation2 + $0x4] sm:$0xf] %vm278_vm3, %v276_v10 }
  0xa0   : > { %v296_v11 = vld [vmem:[#allocation2 + $0x8] sm:$0xf] }
  0xa1   : > { %461 = vmatpush.msk.msra.mxu0 %vm307_vm4, %v296_v11 }
  0xa2   : > { %v295_v12 = vld [vmem:[#allocation2] sm:$0xff] }
  0xa3   : > { %326 = vmatpush.msra.mxu0 %v295_v12 }
  0xa4   : > { %462 = vmatmul.msk.f32.vlgmr.msra.gmra.mxu0 %vm303_vm5, %v294_v13 }
 0x121   : > { %v328_v15 = vpop.f32.mrf.mxu0 }
 0x122   : > { %v329_v16 = vadd.f32 %v328_v15, %v301_v14 }
 0x124   : > { %331 = vst [vmem:[%s248_s11] sm:$0xff] %v329_v16 }
 0x125   : > { %596 = shalt.err (!%p593_p9)
}
 0x126   : > { %472 = dma.vmem_to_hbm [thread:$0]  (%p722_p4), %s347_s12, 128, %s349_s13, %s333_s14  }
 0x127 PF: > { %p484_p10 = scmp.ge.s32.totalorder %s651_s20, 2  ;;  %s360_s5 = sand.u32 1, %s631_s15  }
 0x128   : > { %s361_s6 = scalar_lea.sflag [#allocation5], %s360_s5 }
 0x129   : > { %p479_p11 = pnand %p484_p10, %p729_p8 }
 0x12b   : > { %p480_p12 = pneg %p479_p11 }
 0x12d   : > { %626 = dma.done.wait (%p480_p12), %s361_s6, 128  }
 0x12e   : > { %628 = vsyncadd (%p480_p12), %s361_s6, 4294967168  ;;  %s18_s20 = sadd.s32 1, %s651_s20   ;;  %s795_s15 = smov %s635_s16 }
 0x12f   : > { %p15_p13 = scmp.ge.s32.totalorder %s18_s20, 4   ;;  %s796_s16 = smov %s639_s17 }
 0x130   : > { %s797_s17 = smov %s735_s28  ;;  %s798_s18 = smov %s647_s19 }
 0x131   : > { %s799_s19 = smov %s801_s23  ;;  %17 = sbr.rel (!%p15_p13) target bundleno = 5 (0x5), region = 79 }
 0x136   :  { %367 = vsyncpa [#allocation4], 1 }
 0x137   :  { %369 = vsyncpa [#allocation4 + $0x1], 1 }
 0x138   :  { %370 = vsyncpa [#allocation5], 1 }
 0x139   :  { %372 = vsyncpa [#allocation5 + $0x1], 1 }

</bundles_post_ra>
